<compile_context>
chip_gen: v7x
topology: tpu7x:2x2x1
jax: 0.10.0
libtpu: 0.0.40
codegen_flags: <defaults>
</compile_context>

<pallas_src>
import jax
import jax.numpy as jnp
from jax.experimental import pallas as pl
from jax.experimental.pallas import tpu as pltpu

_HIDDEN = 40            # fixed by the PyTorch module
_LANE = 128             # vreg lane width
_SUBLANE = 8            # f32 sublane quantum
_DEFAULT_BLOCK_B = 16384   # default max batch columns per grid step
_MAX_BLOCK_B = 65536       # hard ceiling: keeps footprint << v7x's 64 MiB VMEM


def _round_up(n, m):
    return ((n + m - 1) // m) * m


def _pad8(n):
    return _round_up(n, _SUBLANE)


# --------------------------------------------------------------------------
# Kernel body (feature-major / batch-on-lanes)
# --------------------------------------------------------------------------
def slp_kernel(x_ref, w1_ref, b1_ref, w2_ref, b2_ref, o_ref):
    """o = w2 @ relu(w1 @ x + b1) + b2, with the batch on the lane axis."""
    x = x_ref[...]                       # (D_in, TB) f32, lane-dense
    w1 = w1_ref[...]                     # (H, D_in)  f32
    d_in = w1.shape[1]                   # static at trace time

    if d_in <= 8:
        # Tiny contraction dim: D_in broadcast FMAs on the VPU.
        # x[k:k+1, :] is a stride-0 sublane broadcast (effectively free);
        # the (H, 1) weight-column lane broadcast is a handful of XLU ops on
        # an otherwise idle unit.  Sequential accumulate chain -> a single
        # live (H, TB) accumulator, no MXU push / result-FIFO latency for K=4.
        h = w1[:, 0:1] * x[0:1, :]
        for k in range(1, d_in):         # static unroll
            h = h + w1[:, k:k + 1] * x[k:k + 1, :]
    else:
        h = jnp.dot(w1, x, preferred_element_type=jnp.float32)

    h = jnp.maximum(h + b1_ref[...], 0.0)          # bias + ReLU (VPU)

    # Layer 2 on the MXU with the batch as the N (lane) dimension: result
    # vreg columns are dense.  f32 accumulation; bias folded into the epilogue.
    o = jnp.dot(w2_ref[...], h, preferred_element_type=jnp.float32) + b2_ref[...]
    o_ref[...] = o.astype(o_ref.dtype)


# --------------------------------------------------------------------------
# VMEM sizing helpers
# --------------------------------------------------------------------------
def _vmem_limit_bytes(n_bytes):
    # Never go below the most generous scoped default (32 MiB) and stay well
    # under v7x's 64 MiB physical VMEM.
    return int(min(max(n_bytes + (8 << 20), 32 << 20), 48 << 20))


def _gridded_footprint_bytes(block_b, d_in, hidden, d_out):
    f32 = 4
    x_bufs = 2 * _pad8(d_in) * block_b * f32         # double-buffered x tiles
    o_bufs = 2 * _pad8(d_out) * block_b * f32        # double-buffered out tiles
    h_live = 2 * _pad8(hidden) * block_b * f32       # h + one temporary
    resident = 4 * (_pad8(hidden) + _pad8(d_in) + _pad8(d_out) + _SUBLANE) * _LANE * f32
    return x_bufs + o_bufs + h_live + resident


def _small_footprint_bytes(batch, d_in, hidden, d_out):
    f32 = 4
    cols = _round_up(max(batch, 1), _LANE)
    return (_pad8(d_in) + _pad8(d_out) + 2 * _pad8(hidden)) * cols * f32 + (1 << 20)


def _pick_block_b(batch, max_block_b):
    """Largest tile <= max_block_b (multiple of 128 lanes) giving an even
    number of grid steps, so both v7x TensorCores get equal work under
    dimension_semantics=("parallel",).  Best effort: rounding the tile to the
    128-lane quantum can occasionally leave an odd step count for awkward B."""
    max_block_b = max(_LANE, _round_up(max_block_b, _LANE))
    n_tiles = pl.cdiv(batch, max_block_b)
    n_tiles = max(2, n_tiles + (n_tiles % 2))          # even, >= 2
    return _round_up(pl.cdiv(batch, n_tiles), _LANE)


# --------------------------------------------------------------------------
# Wrappers
# --------------------------------------------------------------------------
def slp_forward_t(x_t, w1, b1, w2, b2, *, block_b=_DEFAULT_BLOCK_B):
    """Feature-major fused SLP forward (the fast path).

    x_t: (D_in, B) f32    -- batch on the lane dimension
    w1 : (H, D_in) f32, b1: (H, 1) f32       (nn.Linear parameter layout)
    w2 : (D_out, H) f32, b2: (D_out, 1) f32
    returns (D_out, B) f32
    """
    d_in, batch = x_t.shape
    hidden = w1.shape[0]
    d_out = w2.shape[0]
    block_b = min(int(block_b), _MAX_BLOCK_B)
    out_shape = jax.ShapeDtypeStruct((d_out, batch), jnp.float32)

    if batch <= max(block_b, _LANE):
        # Small batch: one full-array block per operand, no grid, no pipeline
        # machinery -- everything is VMEM-resident for the single body run.
        return pl.pallas_call(
            slp_kernel,
            out_shape=out_shape,
            in_specs=[pl.BlockSpec(memory_space=pltpu.MemorySpace.VMEM)] * 5,
            out_specs=pl.BlockSpec(memory_space=pltpu.MemorySpace.VMEM),
            compiler_params=pltpu.CompilerParams(
                vmem_limit_bytes=_vmem_limit_bytes(
                    _small_footprint_bytes(batch, d_in, hidden, d_out))),
        )(x_t, w1, b1, w2, b2)

    # Streaming path: tile the batch (= lane) dimension.  Lane-dense tiles
    # mean the last partial block (ragged B) is handled by Pallas' masked
    # writeback; padded input columns never contaminate valid columns because
    # both layers are column-independent.
    bb = _pick_block_b(batch, block_b)
    grid = (pl.cdiv(batch, bb),)
    return pl.pallas_call(
        slp_kernel,
        out_shape=out_shape,
        grid=grid,
        in_specs=[
            pl.BlockSpec((d_in, bb), lambda i: (0, i)),       # lane-dense x tile
            pl.BlockSpec((hidden, d_in), lambda i: (0, 0)),   # resident weights
            pl.BlockSpec((hidden, 1), lambda i: (0, 0)),
            pl.BlockSpec((d_out, hidden), lambda i: (0, 0)),
            pl.BlockSpec((d_out, 1), lambda i: (0, 0)),
        ],
        out_specs=pl.BlockSpec((d_out, bb), lambda i: (0, i)),  # lane-dense out
        compiler_params=pltpu.CompilerParams(
            # Batch tiles are independent -> shards across v7x's 2 TensorCores
            # (no-op on v5e/v6e).
            dimension_semantics=("parallel",),
            vmem_limit_bytes=_vmem_limit_bytes(
                _gridded_footprint_bytes(bb, d_in, hidden, d_out)),
        ),
    )(x_t, w1, b1, w2, b2)


def slp_forward(x, w1, b1, w2, b2, *, block_b=_DEFAULT_BLOCK_B):
    """Module-compatible fused SLP forward: relu(x @ w1.T + b1) @ w2.T + b2.

    x : (B, D_in) f32 (row-major, as the PyTorch module takes it)
    w1: (H, D_in) f32, b1: (H,) f32          (nn.Linear parameter layout)
    w2: (D_out, H) f32, b2: (D_out,) f32
    returns (B, D_out) f32

    The kernel itself is feature-major; the two boundary transposes below are
    an extra HBM pass at large B -- producers that can emit x as (D_in, B)
    should call slp_forward_t directly.
    """
    hidden = w1.shape[0]
    d_out = w2.shape[0]
    out_t = slp_forward_t(
        x.T, w1, b1.reshape(hidden, 1), w2, b2.reshape(d_out, 1),
        block_b=block_b)
    return out_t.T


def init_slp_params(key, input_dim, output_dim, hidden_dim=_HIDDEN):
    """nn.Linear-style U(-1/sqrt(fan_in), 1/sqrt(fan_in)) init, in nn.Linear's
    (out_features, in_features) layout."""
    k1, k2, k3, k4 = jax.random.split(key, 4)
    bound1 = 1.0 / jnp.sqrt(jnp.float32(input_dim))
    bound2 = 1.0 / jnp.sqrt(jnp.float32(hidden_dim))
    w1 = jax.random.uniform(k1, (hidden_dim, input_dim), jnp.float32, -bound1, bound1)
    b1 = jax.random.uniform(k2, (hidden_dim,), jnp.float32, -bound1, bound1)
    w2 = jax.random.uniform(k3, (output_dim, hidden_dim), jnp.float32, -bound2, bound2)
    b2 = jax.random.uniform(k4, (output_dim,), jnp.float32, -bound2, bound2)
    return w1, b1, w2, b2


if __name__ == "__main__":
    key = jax.random.PRNGKey(0)
    kx1, kx2, kp = jax.random.split(key, 3)

    # Shapes consistent with the module: an RL observation of dim 4
    # (input_shape=(4,)), 2 discrete actions (output_shape=2), hidden=40.
    input_dim, output_dim = 4, 2
    w1, b1, w2, b2 = init_slp_params(kp, input_dim, output_dim)

    hi = jax.lax.Precision.HIGHEST

    def ref_fn(x):
        h = jnp.maximum(jnp.dot(x, w1.T, precision=hi) + b1, 0.0)
        return jnp.dot(h, w2.T, precision=hi) + b2

    # 1) Small batch: grid-less, fully VMEM-resident path.
    x_small = jax.random.normal(kx1, (8, input_dim), jnp.float32)
    out_small = jax.block_until_ready(slp_forward(x_small, w1, b1, w2, b2))
    assert out_small.shape == (8, output_dim)
    assert jnp.allclose(out_small, ref_fn(x_small), atol=1e-5, rtol=1e-5)

    # 2) Gridded streaming path with a ragged batch (B % block_b != 0):
    #    exercises the even-tile picker, resident weights, lane-dense stores
    #    and masked writeback of the partial last tile.
    x_big = jax.random.normal(kx2, (1000, input_dim), jnp.float32)
    out_big = jax.block_until_ready(
        slp_forward(x_big, w1, b1, w2, b2, block_b=256))
    assert out_big.shape == (1000, output_dim)
    assert jnp.allclose(out_big, ref_fn(x_big), atol=1e-5, rtol=1e-5)

    print("KERNEL_OK")
</pallas_src>

<mosaic_0001>
module attributes {stable_mosaic.version = 11 : i64} {
  func.func @slp_kernel(%arg0: memref<4x8xf32, #tpu.memory_space<vmem>>, %arg1: memref<40x4xf32, #tpu.memory_space<vmem>>, %arg2: memref<40x1xf32, #tpu.memory_space<vmem>>, %arg3: memref<2x40xf32, #tpu.memory_space<vmem>>, %arg4: memref<2x1xf32, #tpu.memory_space<vmem>>, %arg5: memref<2x8xf32, #tpu.memory_space<vmem>>) attributes {dimension_semantics = [], scalar_prefetch = 0 : i64, scratch_operands = 0 : i64, tpu.core_type = #tpu.core_type<tc>} {
    %c0 = arith.constant 0 : index
    %c0_0 = arith.constant 0 : index
    %0 = vector.load %arg0[%c0, %c0_0] : memref<4x8xf32, #tpu.memory_space<vmem>>, vector<4x8xf32>
    %c0_1 = arith.constant 0 : index
    %c0_2 = arith.constant 0 : index
    %1 = vector.load %arg1[%c0_1, %c0_2] : memref<40x4xf32, #tpu.memory_space<vmem>>, vector<40x4xf32>
    %2 = vector.extract_strided_slice %1 {offsets = [0, 0], sizes = [40, 1], strides = [1, 1]} : vector<40x4xf32> to vector<40x1xf32>
    %3 = vector.extract_strided_slice %0 {offsets = [0, 0], sizes = [1, 8], strides = [1, 1]} : vector<4x8xf32> to vector<1x8xf32>
    %4 = vector.broadcast %2 : vector<40x1xf32> to vector<40x8xf32>
    %5 = vector.broadcast %3 : vector<1x8xf32> to vector<40x8xf32>
    %6 = arith.mulf %4, %5 : vector<40x8xf32>
    %7 = vector.extract_strided_slice %1 {offsets = [0, 1], sizes = [40, 1], strides = [1, 1]} : vector<40x4xf32> to vector<40x1xf32>
    %8 = vector.extract_strided_slice %0 {offsets = [1, 0], sizes = [1, 8], strides = [1, 1]} : vector<4x8xf32> to vector<1x8xf32>
    %9 = vector.broadcast %7 : vector<40x1xf32> to vector<40x8xf32>
    %10 = vector.broadcast %8 : vector<1x8xf32> to vector<40x8xf32>
    %11 = arith.mulf %9, %10 : vector<40x8xf32>
    %12 = arith.addf %6, %11 : vector<40x8xf32>
    %13 = vector.extract_strided_slice %1 {offsets = [0, 2], sizes = [40, 1], strides = [1, 1]} : vector<40x4xf32> to vector<40x1xf32>
    %14 = vector.extract_strided_slice %0 {offsets = [2, 0], sizes = [1, 8], strides = [1, 1]} : vector<4x8xf32> to vector<1x8xf32>
    %15 = vector.broadcast %13 : vector<40x1xf32> to vector<40x8xf32>
    %16 = vector.broadcast %14 : vector<1x8xf32> to vector<40x8xf32>
    %17 = arith.mulf %15, %16 : vector<40x8xf32>
    %18 = arith.addf %12, %17 : vector<40x8xf32>
    %19 = vector.extract_strided_slice %1 {offsets = [0, 3], sizes = [40, 1], strides = [1, 1]} : vector<40x4xf32> to vector<40x1xf32>
    %20 = vector.extract_strided_slice %0 {offsets = [3, 0], sizes = [1, 8], strides = [1, 1]} : vector<4x8xf32> to vector<1x8xf32>
    %21 = vector.broadcast %19 : vector<40x1xf32> to vector<40x8xf32>
    %22 = vector.broadcast %20 : vector<1x8xf32> to vector<40x8xf32>
    %23 = arith.mulf %21, %22 : vector<40x8xf32>
    %24 = arith.addf %18, %23 : vector<40x8xf32>
    %c0_3 = arith.constant 0 : index
    %c0_4 = arith.constant 0 : index
    %25 = vector.load %arg2[%c0_3, %c0_4] : memref<40x1xf32, #tpu.memory_space<vmem>>, vector<40x1xf32>
    %26 = vector.broadcast %25 : vector<40x1xf32> to vector<40x8xf32>
    %27 = arith.addf %24, %26 : vector<40x8xf32>
    %cst = arith.constant 0.000000e+00 : f32
    %28 = vector.broadcast %cst : f32 to vector<40x8xf32>
    %29 = arith.maximumf %27, %28 : vector<40x8xf32>
    %c0_5 = arith.constant 0 : index
    %c0_6 = arith.constant 0 : index
    %30 = vector.load %arg3[%c0_5, %c0_6] : memref<2x40xf32, #tpu.memory_space<vmem>>, vector<2x40xf32>
    %cst_7 = arith.constant dense<0.000000e+00> : vector<2x8xf32>
    %31 = tpu.matmul %30, %29, %cst_7 {dimension_numbers = #tpu.dot_dimension_numbers<[1], [0], [0], [1], [0, 0, 1, 1], [], []>} : vector<2x40xf32>, vector<40x8xf32>, vector<2x8xf32> -> vector<2x8xf32>
    %c0_8 = arith.constant 0 : index
    %c0_9 = arith.constant 0 : index
    %32 = vector.load %arg4[%c0_8, %c0_9] : memref<2x1xf32, #tpu.memory_space<vmem>>, vector<2x1xf32>
    %33 = vector.broadcast %32 : vector<2x1xf32> to vector<2x8xf32>
    %34 = arith.addf %31, %33 : vector<2x8xf32>
    %c0_10 = arith.constant 0 : index
    %c0_11 = arith.constant 0 : index
    %35 = vector.load %arg5[%c0_10, %c0_11] : memref<2x8xf32, #tpu.memory_space<vmem>>, vector<2x8xf32>
    tpu.vector_store %arg5[%c0_10, %c0_11], %34 {strides = array<i32>} : memref<2x8xf32, #tpu.memory_space<vmem>>, vector<2x8xf32>,
    return
  }
}

</mosaic_0001>

<bundles_post_ra>
// kernel: tpu_custom_call.1
= control target key start
LH: loop header
LB: loop body
LE: loop exit
PB: predicated region body
PF: predicated region fallthrough
CT: control target
= control target key end

     0   :  { %v374_v1 = vmov 3   ;;  %v375_v2 = vmov 1   ;;  %s470_s0 = inlined_call_operand.vmem [shape: f32[4,8], index: 0, kind: input, shape index: {}]   ;;  %s471_s1 = inlined_call_operand.vmem [shape: f32[40,4], index: 1, kind: input, shape index: {}]   ;;  %s472_s2 = inlined_call_operand.vmem [shape: f32[40,1], index: 2, kind: input, shape index: {}]   ;;  %s473_s3 = inlined_call_operand.vmem [shape: f32[2,40], index: 3, kind: input, shape index: {}]   ;;  %s474_s4 = inlined_call_operand.vmem [shape: f32[2,1], index: 4, kind: input, shape index: {}]   ;;  %s475_s5 = inlined_call_operand.hbm [shape: f32[2,8], index: 5, kind: output, shape index: {}]  }
   0x1   :  { %v22_v0 = vld [vmem:[%s471_s1] sm:$0xff]  ;;  %338 = vset.pattern.permute.xlu0 %v374_v1  ;;  %334 = vset.pattern.permute.xlu1 %v375_v2  ;;  %v23_v3 = vld [vmem:[%s471_s1 + $0x8] sm:$0xff] }
   0x2   :  { %130 = vperm.xlu0 %338, %v22_v0   ;;  %62 = vperm.xlu1 %334, %v22_v0  }
   0x3   :  { %10 = vsyncpa [#allocation3], 0  ;;  %v376_v4 = vmov 2   ;;  %v25_v5 = vld [vmem:[%s471_s1 + $0x18] sm:$0xff]  ;;  %v26_v6 = vld [vmem:[%s471_s1 + $0x20] sm:$0xff]  ;;  %v377_v8 = vmov 0   ;;  %v52_v24 = vlaneseq }
   0x4   :  { %v24_v7 = vld [vmem:[%s471_s1 + $0x10] sm:$0xff]  ;;  %v163_v9 = vld [vmem:[%s472_s2] sm:$0xff]  ;;  %v166_v10 = vld [vmem:[%s472_s2 + $0x18] sm:$0xff]  ;;  %v378_v13 = vmov 0.0|0.0   ;;  %vm379_vm0 = vmmov 0   ;;  %v380_v16 = vmov 0.0  }
   0x5   :  { %v204_v11 = vld [vmem:[%s474_s4] sm:$0x3]  ;;  %v164_v12 = vld [vmem:[%s472_s2 + $0x8] sm:$0xff]  ;;  %320 = vmatprep.subr.bf16.mxu0 %v378_v13  ;;  %v165_v14 = vld [vmem:[%s472_s2 + $0x10] sm:$0xff]  ;;  %317 = vmatprep.mubr.msk.f32.mxu0 %vm379_vm0, %v380_v16  ;;  %v53_v27 = vshrl.u32 %v52_v24, 7  ;;  %vm210_vm1 = vcmask 326656  }
   0x6   :  { %339 = vset.pattern.permute.xlu0 %v376_v4  ;;  %66 = vperm.xlu1 %334, %v23_v3   ;;  %v167_v15 = vld [vmem:[%s472_s2 + $0x20] sm:$0xff]  ;;  %s381_s15 = smov [#allocation2]   ;;  %vm284_vm2 = vcmask 58368  }
   0x7   :  { %96 = vperm.xlu0 %339, %v22_v0   ;;  %v83_v30 = vsub.s32 1, %v53_v27  ;;  %v54_v31 = vsub.s32 0, %v53_v27  ;;  %v21_v32 = vld [vmem:[%s470_s0] sm:$0xf]  ;;  %v117_v35 = vsub.s32 2, %v53_v27  ;;  %v151_v38 = vsub.s32 3, %v53_v27 }
   0x8   :  { %s292_s16 = sshll.u32 %s381_s15, 4  ;;  %s293_s16 = int_to_ptr.vmem [resolvable:$true] %s292_s16 }
   0x9   :  { %v84_v34 = vrot.slane %v21_v32, %v83_v30  ;;  %v55_v36 = vrot.slane %v21_v32, %v54_v31  ;;  %v118_v42 = vrot.slane %v21_v32, %v117_v35  ;;  %v152_v44 = vrot.slane %v21_v32, %v151_v38  ;;  %s350_s17 = scalar_lea.vmem %s293_s16, 32  ;;  %p355_p1 = scmp.lt.s32.totalorder %s293_s16, %s293_s16 }
   0xa   :  { %335 = vset.pattern.permute.xlu1 %v376_v4  ;;  %p351_p0 = scmp.ne.s32.totalorder %s293_s16, %s350_s17  ;;  %p356_p2 = scmp.lt.s32.totalorder %s350_s17, %s350_s17 }
   0xb   :  { %108 = vperm.xlu0 %339, %v25_v5   ;;  %100 = vperm.xlu1 %335, %v23_v3  }
   0xc   :  { %p357_p3 = por %p356_p2, %p355_p1 }
   0xe   :  { %p358_p4 = pnand %p357_p3, %p351_p0 }
   0xf   :  { %344 = vset.pattern.permute.xlu0 %v375_v2  ;;  %336 = vset.pattern.permute.xlu1 %v377_v8 }
  0x10   :  { %78 = vperm.xlu0 %344, %v26_v6   ;;  %39 = vperm.xlu1 %336, %v24_v7  }
  0x14   :  { %345 = vset.pattern.permute.xlu0 %v377_v8  ;;  %337 = vset.pattern.permute.xlu1 %v375_v2 }
  0x15   :  { %29 = vperm.xlu0 %345, %v22_v0   ;;  %70 = vperm.xlu1 %337, %v24_v7  }
  0x19   :  { %34 = vperm.xlu0 %345, %v23_v3   ;;  %74 = vperm.xlu1 %337, %v25_v5  }
  0x1d   :  { %44 = vperm.xlu0 %345, %v25_v5   ;;  %340 = vset.pattern.permute.xlu1 %v374_v1 }
  0x1e   :  { %134 = vperm.xlu1 %340, %v23_v3  }
  0x21   :  { %170 = vperm.xlu0 %345, %v163_v9  }
  0x22   :  { %341 = vset.pattern.permute.xlu1 %v376_v4 }
  0x23   :  { %104 = vperm.xlu1 %341, %v24_v7  }
  0x25   :  { %185 = vperm.xlu0 %345, %v166_v10  }
  0x27   :  { %342 = vset.pattern.permute.xlu1 %v374_v1 }
  0x28   :  { %138 = vperm.xlu1 %342, %v24_v7  }
  0x29   :  { %207 = vperm.xlu0 %345, %v204_v11  }
  0x2c   :  { %142 = vperm.xlu1 %342, %v25_v5  }
  0x30   :  { %343 = vset.pattern.permute.xlu1 %v377_v8 }
  0x31   :  { %175 = vperm.xlu1 %343, %v164_v12  }
  0x35   :  { %49 = vperm.xlu1 %343, %v26_v6  }
  0x39   :  { %346 = vset.pattern.permute.xlu1 %v376_v4 }
  0x3a   :  { %112 = vperm.xlu1 %346, %v26_v6  }
  0x3e   :  { %347 = vset.pattern.permute.xlu1 %v377_v8 }
  0x3f   :  { %180 = vperm.xlu1 %347, %v165_v14  }
  0x43   :  { %348 = vset.pattern.permute.xlu1 %v374_v1 }
  0x44   :  { %146 = vperm.xlu1 %348, %v26_v6  }
  0x48   :  { %349 = vset.pattern.permute.xlu1 %v377_v8 }
  0x49   :  { %190 = vperm.xlu1 %349, %v167_v15  }
  0x81   :  { %v63_v17 = vpop.permute.xlu1 %62  ;;  %v131_v18 = vpop.permute.xlu0 %130 }
  0x82   :  { %v85_v41 = vmul.f32 %v84_v34, %v63_v17  ;;  %v153_v51 = vmul.f32 %v152_v44, %v131_v18 }
  0x85   :  { %v67_v19 = vpop.permute.xlu1 %66 }
  0x86   :  { %v97_v20 = vpop.permute.xlu0 %96  ;;  %v86_v45 = vmul.f32 %v84_v34, %v67_v19 }
  0x87   :  { %v119_v46 = vmul.f32 %v118_v42, %v97_v20 }
  0x8a   :  { %v101_v21 = vpop.permute.xlu1 %100  ;;  %v109_v22 = vpop.permute.xlu0 %108 }
  0x8b   :  { %v120_v52 = vmul.f32 %v118_v42, %v101_v21  ;;  %v122_v1 = vmul.f32 %v118_v42, %v109_v22 }
  0x8f   :  { %v40_v23 = vpop.permute.xlu1 %39  ;;  %v447_v25 = vpop.permute.xlu0 %78 }
  0x90   :  { %v58_v9 = vmul.f32 %v55_v36, %v40_v23 }
  0x94   :  { %v71_v26 = vpop.permute.xlu1 %70  ;;  %v30_v29 = vpop.permute.xlu0 %29 }
  0x95   :  { %v56_v39 = vmul.f32 %v55_v36, %v30_v29  ;;  %v87_v6 = vmul.f32 %v84_v34, %v71_v26  ;;  %v89_v26 = vmul.f32 %v84_v34, %v447_v25 }
  0x97   :  { %v90_v47 = vadd.f32 %v85_v41, %v56_v39  ;;  %v92_v12 = vadd.f32 %v87_v6, %v58_v9 }
  0x98   :  { %v75_v28 = vpop.permute.xlu1 %74  ;;  %v35_v37 = vpop.permute.xlu0 %34 }
  0x99   :  { %v57_v43 = vmul.f32 %v55_v36, %v35_v37  ;;  %v124_v53 = vadd.f32 %v119_v46, %v90_v47  ;;  %v88_v63 = vmul.f32 %v84_v34, %v75_v28 }
  0x9b   :  { %v91_v49 = vadd.f32 %v86_v45, %v57_v43  ;;  %v158_v58 = vadd.f32 %v153_v51, %v124_v53 }
  0x9c   :  { %v45_v48 = vpop.permute.xlu0 %44 }
  0x9d   :  { %v135_v33 = vpop.permute.xlu1 %134  ;;  %v125_v56 = vadd.f32 %v120_v52, %v91_v49  ;;  %v59_v59 = vmul.f32 %v55_v36, %v45_v48 }
  0x9e   :  { %v154_v54 = vmul.f32 %v152_v44, %v135_v33 }
  0x9f   :  { %v93_v2 = vadd.f32 %v88_v63, %v59_v59 }
  0xa0   :  { %v171_v57 = vpop.permute.xlu0 %170  ;;  %v159_v61 = vadd.f32 %v154_v54, %v125_v56 }
  0xa1   :  { %v193_v60 = vadd.f32 %v171_v57, %v158_v58  ;;  %v127_v11 = vadd.f32 %v122_v1, %v93_v2 }
  0xa2   :  { %v105_v40 = vpop.permute.xlu1 %104 }
  0xa3   :  { %v198_v3 = vmax.f32 %v193_v60, 0.0  ;;  %v121_v10 = vmul.f32 %v118_v42, %v105_v40 }
  0xa4   :  { %v186_v18 = vpop.permute.xlu0 %185 }
  0xa5   :  { %v126_v19 = vadd.f32 %v121_v10, %v92_v12 }
  0xa7   :  { %v139_v50 = vpop.permute.xlu1 %138 }
  0xa8   :  { %v155_v14 = vmul.f32 %v152_v44, %v139_v50  ;;  %v208_v25 = vpop.permute.xlu0 %207 }
  0xaa   :  { %v160_v21 = vadd.f32 %v155_v14, %v126_v19 }
  0xab   :  { %v143_v55 = vpop.permute.xlu1 %142 }
  0xac   :  { %v156_v7 = vmul.f32 %v152_v44, %v143_v55 }
  0xae   :  { %v161_v15 = vadd.f32 %v156_v7, %v127_v11 }
  0xb0   :  { %v176_v62 = vpop.permute.xlu1 %175  ;;  %v196_v20 = vadd.f32 %v186_v18, %v161_v15 }
  0xb1   :  { %v194_v0 = vadd.f32 %v176_v62, %v159_v61 }
  0xb2   :  { %v201_v23 = vmax.f32 %v196_v20, 0.0 }
  0xb3   :  { %v199_v4 = vmax.f32 %v194_v0, 0.0 }
  0xb4   :  { %v50_v5 = vpop.permute.xlu1 %49 }
  0xb5   :  { %v321_v8 = vpack.c.bf16 %v199_v4, %v198_v3  ;;  %v60_v22 = vmul.f32 %v55_v36, %v50_v5  ;;  %v203_v36 = vld [vmem:[%s473_s3] sm:$0x3] }
  0xb7   :  { %322 = vmatpush3.bf16.msra.mxu0 %v321_v8  ;;  %v94_v30 = vadd.f32 %v89_v26, %v60_v22 }
  0xb8   :  { %323 = vmatprep.subr.bf16.mxu0 %v378_v13 }
  0xb9   :  { %v113_v17 = vpop.permute.xlu1 %112 }
  0xba   :  { %v123_v28 = vmul.f32 %v118_v42, %v113_v17 }
  0xbc   :  { %v128_v13 = vadd.f32 %v123_v28, %v94_v30 }
  0xbe   :  { %v181_v24 = vpop.permute.xlu1 %180 }
  0xbf   :  { %v195_v27 = vadd.f32 %v181_v24, %v160_v21 }
  0xc1   :  { %v200_v29 = vmax.f32 %v195_v27, 0.0 }
  0xc3   :  { %v324_v31 = vpack.c.bf16 %v201_v23, %v200_v29  ;;  %v147_v32 = vpop.permute.xlu1 %146 }
  0xc4   :  { %v157_v33 = vmul.f32 %v152_v44, %v147_v32 }
  0xc5   :  { %325 = vmatpush3.bf16.msra.mxu0 %v324_v31 }
  0xc6   :  { %v162_v35 = vadd.f32 %v157_v33, %v128_v13  ;;  %315 = vmatprep.subr.mxu0 %v380_v16 }
  0xc8   :  { %v191_v37 = vpop.permute.xlu1 %190 }
  0xc9   :  { %v197_v38 = vadd.f32 %v191_v37, %v162_v35 }
  0xcb   :  { %v202_v39 = vmax.f32 %v197_v38, 0.0 }
  0xcd   :  { %316 = vmatpush3.msra.mxu0 %v202_v39 }
  0xce   :  { %318 = vmatmul.mubr.msk.f32.vlgmr.msra.gmra.mrb[0].mxu0 %vm210_vm1, %v203_v36 }
 0x1a1   :  { %v280_v34 = vpop.f32.mrb[0].mxu0 }
 0x1a2   :  { %v281_v40 = vadd.f32 %v280_v34, %v208_v25  ;;  %v319_v41 = vpop.f32.mrb[1].mxu0 }
 0x1a4   :  { %285 = vst.msk [vmem:[#allocation2] sm:$0x3] %vm284_vm2, %v281_v40 }
 0x1a5   :  { %361 = shalt.err (!%p358_p4)
}
 0x1a6   :  { %s362_s19 = scalar_lea.hbm %s475_s5, 32 }
 0x1a7   :  { %p363_p5 = scmp.ne.s32.totalorder %s475_s5, %s362_s19  ;;  %p366_p6 = scmp.lt.u32.totalorder %s362_s19, %s475_s5 }
 0x1a9   :  { %p368_p7 = pnand %p366_p6, %p363_p5 }
 0x1ab   :  { %371 = shalt.err (!%p368_p7)
}
 0x1ac   :  { %295 = dma.vmem_to_hbm [thread:$0]  %s293_s16, 32, %s475_s5, [#allocation3]  }
 0x1ad   :  { %372 = dma.done.wait [#allocation3], 32  }
 0x1ae   :  { %373 = vsyncadd [#allocation3], 4294967264 }
 0x1af   :  { %299 = vsyncpa [#allocation3], 1 }

</bundles_post_ra>
